<compile_context>
chip_gen: v7x
topology: tpu7x:2x2x1
jax: 0.10.0
libtpu: 0.0.40
codegen_flags: <defaults>
</compile_context>

<pallas_src>
import math
import jax
import jax.numpy as jnp
from jax import lax
from jax.experimental import pallas as pl
from jax.experimental.pallas import tpu as pltpu


def _round_up(x, m):
    return ((x + m - 1) // m) * m


_VMEM_LIMIT = 64 * 1024 * 1024   # fits v7x physical VMEM, well above v5e's 16 MiB default


# ---------------------------------------------------------------------------
# Tiled linear projection kernel:  y = x @ w_t + b   (w_t = weight.T, bf16)
# Activation cast f32->bf16 happens inside the kernel (saves an HBM round trip).
# ---------------------------------------------------------------------------

def _linear_kernel(x_ref, w_ref, b_ref, o_ref):
    x = x_ref[...].astype(jnp.bfloat16)
    o_ref[...] = (
        jnp.dot(x, w_ref[...], preferred_element_type=jnp.float32) + b_ref[...]
    ).astype(o_ref.dtype)


def pallas_linear(x, w_t, b, out_dtype=jnp.float32, tile_m=512):
    """x: [N, Din] (any float dtype), w_t: [Din, Dout] bf16, b: [Dout] f32."""
    n, d_in = x.shape
    d_out = w_t.shape[1]
    tm = min(tile_m, _round_up(n, 8))
    n_pad = _round_up(n, tm)
    if n_pad != n:
        x = jnp.pad(x, ((0, n_pad - n), (0, 0)))
    flops = 2 * n_pad * d_in * d_out
    bytes_acc = (n_pad * d_in * x.dtype.itemsize + d_in * d_out * 2
                 + n_pad * d_out * jnp.dtype(out_dtype).itemsize)
    y = pl.pallas_call(
        _linear_kernel,
        out_shape=jax.ShapeDtypeStruct((n_pad, d_out), out_dtype),
        grid=(n_pad // tm,),
        in_specs=[
            pl.BlockSpec((tm, d_in), lambda i: (i, 0)),       # row tile of x
            pl.BlockSpec((d_in, d_out), lambda i: (0, 0)),    # weight, resident
            pl.BlockSpec((1, d_out), lambda i: (0, 0)),       # bias, resident
        ],
        out_specs=pl.BlockSpec((tm, d_out), lambda i: (i, 0)),
        compiler_params=pltpu.CompilerParams(
            dimension_semantics=("parallel",),
            vmem_limit_bytes=_VMEM_LIMIT),
        cost_estimate=pl.CostEstimate(flops=int(flops), transcendentals=0,
                                      bytes_accessed=int(bytes_acc)),
    )(x, w_t, b.reshape(1, d_out).astype(jnp.float32))
    return y[:n]


# ---------------------------------------------------------------------------
# Fused Q/K/V projection: one launch, three matmuls per row tile, weights
# stay VMEM-resident across the row-tile grid.  Outputs in bf16 (MXU feed for
# the attention kernel).  Input casts are done in-kernel.
# ---------------------------------------------------------------------------

def _qkv_kernel(xq_ref, xk_ref, xv_ref, wq_ref, wk_ref, wv_ref, b_ref,
                q_ref, k_ref, v_ref):
    b = b_ref[...]                                            # [3, E] f32
    xq = xq_ref[...].astype(jnp.bfloat16)
    xk = xk_ref[...].astype(jnp.bfloat16)
    xv = xv_ref[...].astype(jnp.bfloat16)
    q_ref[...] = (jnp.dot(xq, wq_ref[...], preferred_element_type=jnp.float32)
                  + b[0:1, :]).astype(q_ref.dtype)
    k_ref[...] = (jnp.dot(xk, wk_ref[...], preferred_element_type=jnp.float32)
                  + b[1:2, :]).astype(k_ref.dtype)
    v_ref[...] = (jnp.dot(xv, wv_ref[...], preferred_element_type=jnp.float32)
                  + b[2:3, :]).astype(v_ref.dtype)


def pallas_qkv_proj(xq, xk, xv, wq_t, wk_t, wv_t, b_qkv, tile_m=512):
    """xq/xk/xv: [N, E] (same N, any float dtype), w*_t: [E, E] bf16, b_qkv: [3, E] f32."""
    n, e = xq.shape
    tm = min(tile_m, _round_up(n, 8))
    n_pad = _round_up(n, tm)

    def pad(x):
        return jnp.pad(x, ((0, n_pad - n), (0, 0))) if n_pad != n else x

    xq, xk, xv = pad(xq), pad(xk), pad(xv)
    row = pl.BlockSpec((tm, e), lambda i: (i, 0))
    wspec = pl.BlockSpec((e, e), lambda i: (0, 0))
    flops = 3 * 2 * n_pad * e * e
    bytes_acc = 3 * n_pad * e * xq.dtype.itemsize + 3 * e * e * 2 + 3 * n_pad * e * 2
    q, k, v = pl.pallas_call(
        _qkv_kernel,
        out_shape=tuple(jax.ShapeDtypeStruct((n_pad, e), jnp.bfloat16)
                        for _ in range(3)),
        grid=(n_pad // tm,),
        in_specs=[row, row, row, wspec, wspec, wspec,
                  pl.BlockSpec((3, e), lambda i: (0, 0))],
        out_specs=[row, row, row],
        compiler_params=pltpu.CompilerParams(
            dimension_semantics=("parallel",),
            vmem_limit_bytes=_VMEM_LIMIT),
        cost_estimate=pl.CostEstimate(flops=int(flops), transcendentals=0,
                                      bytes_accessed=int(bytes_acc)),
    )(xq, xk, xv, wq_t, wk_t, wv_t, b_qkv)
    return q[:n], k[:n], v[:n]


# ---------------------------------------------------------------------------
# Relation-aware attention kernel.  Grid = (B, Lq-tiles); all heads processed
# per grid step (static loop; n_heads and R = 2*max_rel+1 assumed small).
# The relative-position bucket index and its masks are computed in-kernel,
# once per tile, from iotas (no idx DMAs).
# ---------------------------------------------------------------------------

def _make_attn_kernel(n_heads, head_dim, max_rel, gap, tq, scale):
    num_rel = 2 * max_rel + 1
    inv_scale = 1.0 / float(scale)

    def kernel(q_ref, k_ref, v_ref, rpk_t_ref, rpv_ref, bias_ref,
               ctx_ref, probs_ref):
        lk = k_ref.shape[1]

        # ---- head-invariant work, computed once per (batch, q-tile) step ----
        row0 = pl.program_id(1) * tq
        rows = lax.broadcasted_iota(jnp.int32, (tq, lk), 0) + row0
        cols = lax.broadcasted_iota(jnp.int32, (tq, lk), 1)
        dist = cols - rows
        if gap == 1:
            clipped = jnp.clip(dist, -max_rel, max_rel)
        else:
            clipped = jnp.zeros_like(dist)
            for i in range(1, max_rel + 1):
                tmp = jnp.clip(dist, -i * gap, i * gap)
                tmp = jnp.where(jnp.abs(tmp) != i * gap, 0, tmp)
                # tmp is 0 or +-i*gap, so tmp // (i*gap) == sign(tmp)
                clipped = clipped + jnp.where(tmp > 0, 1,
                                              jnp.where(tmp < 0, -1, 0))
        idx = clipped + max_rel                               # [tq, Lk] int32
        masks = [idx == r for r in range(num_rel)]            # hoisted out of head loop

        bias = bias_ref[0]                                    # [1, Lk] f32  (0 or -1e30)
        rpk_t = rpk_t_ref[...]                                # [Dh, R] bf16
        rpv = rpv_ref[...]                                    # [R, Dh] bf16

        outs = []
        for h in range(n_heads):
            lo = h * head_dim
            # scale folded into the narrow [tq, Dh] q slice (not the [tq, Lk] score)
            q_h = q_ref[0, :, lo:lo + head_dim] * inv_scale   # [tq, Dh] bf16
            k_h = k_ref[0, :, lo:lo + head_dim]               # [Lk, Dh] bf16
            v_h = v_ref[0, :, lo:lo + head_dim]               # [Lk, Dh] bf16

            # content-content scores on the MXU: [tq, Lk]
            attn1 = lax.dot_general(q_h, k_h, (((1,), (1,)), ((), ())),
                                    preferred_element_type=jnp.float32)

            # content-position term, factored:  qr[i, r] = <q_i, rpk_table[r]>
            qr = jnp.dot(q_h, rpk_t, preferred_element_type=jnp.float32)  # [tq, R]
            attn2 = jnp.zeros_like(attn1)
            for r in range(num_rel):
                attn2 = attn2 + jnp.where(masks[r], qr[:, r:r + 1], 0.0)

            score = attn1 + attn2 + bias
            m = jnp.max(score, axis=-1, keepdims=True)
            p = jnp.exp(score - m)
            denom = jnp.sum(p, axis=-1, keepdims=True)
            probs = p * pl.reciprocal(denom, approx=False)    # exact, parity w/ reference

            # attention-weighted values on the MXU: [tq, Dh]
            w1 = jnp.dot(probs.astype(v_h.dtype), v_h,
                         preferred_element_type=jnp.float32)

            # position-value term: bucket the probs over R relative positions,
            # then one small MXU matmul against the rpv table.
            pbucket = jnp.concatenate(
                [jnp.sum(jnp.where(masks[r], probs, 0.0), axis=-1, keepdims=True)
                 for r in range(num_rel)], axis=-1)           # [tq, R]
            w2 = jnp.dot(pbucket.astype(jnp.bfloat16), rpv,
                         preferred_element_type=jnp.float32)  # [tq, Dh]

            outs.append(w1 + w2)
            probs_ref[0, h] = probs.astype(probs_ref.dtype)

        # one lane-dense store of the whole [tq, E] context tile (bf16)
        ctx_ref[0] = jnp.concatenate(outs, axis=-1).astype(ctx_ref.dtype)

    return kernel


def pallas_relation_attention(q, k, v, rpk_t, rpv, neg_bias, n_heads, max_rel,
                              gap, scale, tq=256, probs_dtype=jnp.float32):
    """q/k/v: [B, L, E] bf16; rpk_t: [Dh, R] bf16; rpv: [R, Dh] bf16;
    neg_bias: [B, 1, Lk] f32 additive mask bias."""
    B, Lq, E = q.shape
    Lk = k.shape[1]
    assert k.shape[1] == v.shape[1]
    assert E % n_heads == 0
    Dh = E // n_heads
    R = 2 * max_rel + 1

    tq = min(tq, _round_up(Lq, 8))
    Lqp = _round_up(Lq, tq)
    if Lqp != Lq:
        q = jnp.pad(q, ((0, 0), (0, Lqp - Lq), (0, 0)))
    nq = Lqp // tq

    kernel = _make_attn_kernel(n_heads, Dh, max_rel, gap, tq, float(scale))

    flops = 4 * B * Lqp * Lk * E + 2 * B * Lqp * R * E
    bytes_acc = (B * Lqp * E * 2 + 2 * B * Lk * E * 2 + B * Lqp * E * 2
                 + B * n_heads * Lqp * Lk * jnp.dtype(probs_dtype).itemsize)

    ctx, probs = pl.pallas_call(
        kernel,
        out_shape=(
            jax.ShapeDtypeStruct((B, Lqp, E), jnp.bfloat16),
            jax.ShapeDtypeStruct((B, n_heads, Lqp, Lk), probs_dtype),
        ),
        grid=(B, nq),
        in_specs=[
            pl.BlockSpec((1, tq, E), lambda b, i: (b, i, 0)),        # q tile
            pl.BlockSpec((1, Lk, E), lambda b, i: (b, 0, 0)),        # k (resident per b)
            pl.BlockSpec((1, Lk, E), lambda b, i: (b, 0, 0)),        # v (resident per b)
            pl.BlockSpec((Dh, R), lambda b, i: (0, 0)),              # rpk_table.T
            pl.BlockSpec((R, Dh), lambda b, i: (0, 0)),              # rpv_table
            pl.BlockSpec((1, 1, Lk), lambda b, i: (b, 0, 0)),        # mask bias
        ],
        out_specs=[
            pl.BlockSpec((1, tq, E), lambda b, i: (b, i, 0)),
            pl.BlockSpec((1, n_heads, tq, Lk), lambda b, i: (b, 0, i, 0)),
        ],
        compiler_params=pltpu.CompilerParams(
            dimension_semantics=("parallel", "parallel"),
            vmem_limit_bytes=_VMEM_LIMIT),
        cost_estimate=pl.CostEstimate(flops=int(flops),
                                      transcendentals=int(B * n_heads * Lqp * Lk),
                                      bytes_accessed=int(bytes_acc)),
    )(q, k, v, rpk_t, rpv, neg_bias)
    return ctx[:, :Lq], probs[:, :, :Lq]


# ---------------------------------------------------------------------------
# Parameter setup (plain JAX, tiny)
# ---------------------------------------------------------------------------

def xavier_uniform(key, shape):
    fan_out, fan_in = shape[0], shape[1]
    a = math.sqrt(6.0 / (fan_in + fan_out))
    return jax.random.uniform(key, shape, jnp.float32, -a, a)


def init_params(key, hidden_size, n_heads, max_rel):
    head_dim = hidden_size // n_heads
    ks = jax.random.split(key, 7)
    return {
        "wq": xavier_uniform(ks[0], (hidden_size, hidden_size)),
        "bq": jnp.zeros((hidden_size,), jnp.float32),
        "wk": xavier_uniform(ks[1], (hidden_size, hidden_size)),
        "bk": jnp.zeros((hidden_size,), jnp.float32),
        "wv": xavier_uniform(ks[2], (hidden_size, hidden_size)),
        "bv": jnp.zeros((hidden_size,), jnp.float32),
        "wo": xavier_uniform(ks[3], (hidden_size, hidden_size)),
        "bo": jax.random.uniform(ks[4], (hidden_size,), jnp.float32, -0.1, 0.1),
        "rpk_table": xavier_uniform(ks[5], (2 * max_rel + 1, head_dim)),
        "rpv_table": xavier_uniform(ks[6], (2 * max_rel + 1, head_dim)),
    }


def multihead_attention_rp(params, query, key, value, n_heads, max_rel, gap,
                           key_padding_mask=None, probs_dtype=jnp.float32):
    B, Lq, E = query.shape
    Lk = key.shape[1]
    Lv = value.shape[1]
    assert Lk == Lv, "MultiheadAttention_RP requires len_k == len_v"
    Dh = E // n_heads
    scale = math.sqrt(Dh)
    bf = jnp.bfloat16

    # weights: pre-transposed (torch layout is [Dout, Din]) and cast to bf16 once
    wq_t = jnp.asarray(params["wq"], jnp.float32).T.astype(bf)
    wk_t = jnp.asarray(params["wk"], jnp.float32).T.astype(bf)
    wv_t = jnp.asarray(params["wv"], jnp.float32).T.astype(bf)
    wo_t = jnp.asarray(params["wo"], jnp.float32).T.astype(bf)

    # fused Q/K/V projection (single launch) when the three inputs share a shape
    if query.shape == key.shape == value.shape:
        b_qkv = jnp.stack([params["bq"], params["bk"], params["bv"]]).astype(jnp.float32)
        q2, k2, v2 = pallas_qkv_proj(query.reshape(B * Lq, E),
                                     key.reshape(B * Lk, E),
                                     value.reshape(B * Lv, E),
                                     wq_t, wk_t, wv_t, b_qkv)
        q = q2.reshape(B, Lq, E)
        k = k2.reshape(B, Lk, E)
        v = v2.reshape(B, Lv, E)
    else:
        q = pallas_linear(query.reshape(B * Lq, E), wq_t, params["bq"],
                          out_dtype=bf).reshape(B, Lq, E)
        k = pallas_linear(key.reshape(B * Lk, E), wk_t, params["bk"],
                          out_dtype=bf).reshape(B, Lk, E)
        v = pallas_linear(value.reshape(B * Lv, E), wv_t, params["bv"],
                          out_dtype=bf).reshape(B, Lv, E)

    # factored relative-position tables (tiny, VMEM-resident in the kernel)
    rpk_t = jnp.asarray(params["rpk_table"], jnp.float32).T.astype(bf)   # [Dh, R]
    rpv = jnp.asarray(params["rpv_table"], jnp.float32).astype(bf)       # [R, Dh]

    # finite additive mask bias (avoids 0/0 NaN when a whole row is masked;
    # documented divergence from masked_fill(-inf): fully-masked rows give a
    # uniform distribution instead of NaN)
    if key_padding_mask is None:
        neg_bias = jnp.zeros((B, 1, Lk), jnp.float32)
    else:
        neg_bias = jnp.where(key_padding_mask.reshape(B, 1, Lk) != 0,
                             -1e30, 0.0).astype(jnp.float32)

    ctx, attn_probs = pallas_relation_attention(
        q, k, v, rpk_t, rpv, neg_bias, n_heads, max_rel, gap, scale,
        probs_dtype=probs_dtype)

    # output projection (ctx is already lane-dense bf16 [B, Lq, H*Dh])
    out = pallas_linear(ctx.reshape(B * Lq, E), wo_t, params["bo"],
                        out_dtype=jnp.float32).reshape(B, Lq, E)
    return out, attn_probs


# ---------------------------------------------------------------------------
# Demo
# ---------------------------------------------------------------------------

if __name__ == "__main__":
    B, L, E, H = 2, 8, 32, 4        # batch, seq, hidden_size, n_heads
    MAX_REL, GAP = 4, 1

    root = jax.random.PRNGKey(0)
    k_par, k_q, k_k, k_v = jax.random.split(root, 4)
    params = init_params(k_par, E, H, MAX_REL)

    query = jax.random.normal(k_q, (B, L, E), jnp.float32)
    key = jax.random.normal(k_k, (B, L, E), jnp.float32)
    value = jax.random.normal(k_v, (B, L, E), jnp.float32)

    context, attn_probs = multihead_attention_rp(
        params, query, key, value, n_heads=H, max_rel=MAX_REL, gap=GAP,
        key_padding_mask=None)

    jax.block_until_ready((context, attn_probs))
    assert context.shape == (B, L, E)
    assert attn_probs.shape == (B, H, L, L)
    assert bool(jnp.all(jnp.isfinite(context)))
    assert bool(jnp.all(jnp.isfinite(attn_probs)))
    print("KERNEL_OK")
</pallas_src>

<mosaic_0001>
module attributes {stable_mosaic.version = 11 : i64} {
  func.func @_qkv_kernel(%arg0: i32, %arg1: memref<16x32xf32, #tpu.memory_space<vmem>>, %arg2: memref<16x32xf32, #tpu.memory_space<vmem>>, %arg3: memref<16x32xf32, #tpu.memory_space<vmem>>, %arg4: memref<32x32xbf16, #tpu.memory_space<vmem>>, %arg5: memref<32x32xbf16, #tpu.memory_space<vmem>>, %arg6: memref<32x32xbf16, #tpu.memory_space<vmem>>, %arg7: memref<3x32xf32, #tpu.memory_space<vmem>>, %arg8: memref<16x32xbf16, #tpu.memory_space<vmem>>, %arg9: memref<16x32xbf16, #tpu.memory_space<vmem>>, %arg10: memref<16x32xbf16, #tpu.memory_space<vmem>>) attributes {dimension_semantics = [#tpu.dimension_semantics<parallel>], iteration_bounds = array<i64: 1>, scalar_prefetch = 0 : i64, scratch_operands = 0 : i64, tpu.core_type = #tpu.core_type<tc>, window_params = [{transform_indices = @transform_0, window_bounds = array<i64: 16, 32>}, {transform_indices = @transform_1, window_bounds = array<i64: 16, 32>}, {transform_indices = @transform_2, window_bounds = array<i64: 16, 32>}, {pipeline_mode = #tpu.pipeline_mode<synchronous>, transform_indices = @transform_3, window_bounds = array<i64: 32, 32>}, {pipeline_mode = #tpu.pipeline_mode<synchronous>, transform_indices = @transform_4, window_bounds = array<i64: 32, 32>}, {pipeline_mode = #tpu.pipeline_mode<synchronous>, transform_indices = @transform_5, window_bounds = array<i64: 32, 32>}, {pipeline_mode = #tpu.pipeline_mode<synchronous>, transform_indices = @transform_6, window_bounds = array<i64: 3, 32>}, {transform_indices = @transform_7, window_bounds = array<i64: 16, 32>}, {transform_indices = @transform_8, window_bounds = array<i64: 16, 32>}, {transform_indices = @transform_9, window_bounds = array<i64: 16, 32>}]} {
    %c0 = arith.constant 0 : index
    %c0_0 = arith.constant 0 : index
    %0 = vector.load %arg7[%c0, %c0_0] : memref<3x32xf32, #tpu.memory_space<vmem>>, vector<3x32xf32>
    %c0_1 = arith.constant 0 : index
    %c0_2 = arith.constant 0 : index
    %1 = vector.load %arg1[%c0_1, %c0_2] : memref<16x32xf32, #tpu.memory_space<vmem>>, vector<16x32xf32>
    %2 = arith.truncf %1 : vector<16x32xf32> to vector<16x32xbf16>
    %c0_3 = arith.constant 0 : index
    %c0_4 = arith.constant 0 : index
    %3 = vector.load %arg2[%c0_3, %c0_4] : memref<16x32xf32, #tpu.memory_space<vmem>>, vector<16x32xf32>
    %4 = arith.truncf %3 : vector<16x32xf32> to vector<16x32xbf16>
    %c0_5 = arith.constant 0 : index
    %c0_6 = arith.constant 0 : index
    %5 = vector.load %arg3[%c0_5, %c0_6] : memref<16x32xf32, #tpu.memory_space<vmem>>, vector<16x32xf32>
    %6 = arith.truncf %5 : vector<16x32xf32> to vector<16x32xbf16>
    %c0_7 = arith.constant 0 : index
    %c0_8 = arith.constant 0 : index
    %7 = vector.load %arg4[%c0_7, %c0_8] : memref<32x32xbf16, #tpu.memory_space<vmem>>, vector<32x32xbf16>
    %cst = arith.constant dense<0.000000e+00> : vector<16x32xf32>
    %8 = tpu.matmul %2, %7, %cst {dimension_numbers = #tpu.dot_dimension_numbers<[1], [0], [0], [1], [0, 0, 1, 1], [], []>} : vector<16x32xbf16>, vector<32x32xbf16>, vector<16x32xf32> -> vector<16x32xf32>
    %9 = vector.extract_strided_slice %0 {offsets = [0, 0], sizes = [1, 32], strides = [1, 1]} : vector<3x32xf32> to vector<1x32xf32>
    %10 = vector.broadcast %9 : vector<1x32xf32> to vector<16x32xf32>
    %11 = arith.addf %8, %10 : vector<16x32xf32>
    %12 = arith.truncf %11 : vector<16x32xf32> to vector<16x32xbf16>
    %c0_9 = arith.constant 0 : index
    %c0_10 = arith.constant 0 : index
    %13 = vector.load %arg8[%c0_9, %c0_10] : memref<16x32xbf16, #tpu.memory_space<vmem>>, vector<16x32xbf16>
    tpu.vector_store %arg8[%c0_9, %c0_10], %12 {strides = array<i32>} : memref<16x32xbf16, #tpu.memory_space<vmem>>, vector<16x32xbf16>,
    %c0_11 = arith.constant 0 : index
    %c0_12 = arith.constant 0 : index
    %14 = vector.load %arg5[%c0_11, %c0_12] : memref<32x32xbf16, #tpu.memory_space<vmem>>, vector<32x32xbf16>
    %cst_13 = arith.constant dense<0.000000e+00> : vector<16x32xf32>
    %15 = tpu.matmul %4, %14, %cst_13 {dimension_numbers = #tpu.dot_dimension_numbers<[1], [0], [0], [1], [0, 0, 1, 1], [], []>} : vector<16x32xbf16>, vector<32x32xbf16>, vector<16x32xf32> -> vector<16x32xf32>
    %16 = vector.extract_strided_slice %0 {offsets = [1, 0], sizes = [1, 32], strides = [1, 1]} : vector<3x32xf32> to vector<1x32xf32>
    %17 = vector.broadcast %16 : vector<1x32xf32> to vector<16x32xf32>
    %18 = arith.addf %15, %17 : vector<16x32xf32>
    %19 = arith.truncf %18 : vector<16x32xf32> to vector<16x32xbf16>
    %c0_14 = arith.constant 0 : index
    %c0_15 = arith.constant 0 : index
    %20 = vector.load %arg9[%c0_14, %c0_15] : memref<16x32xbf16, #tpu.memory_space<vmem>>, vector<16x32xbf16>
    tpu.vector_store %arg9[%c0_14, %c0_15], %19 {strides = array<i32>} : memref<16x32xbf16, #tpu.memory_space<vmem>>, vector<16x32xbf16>,
    %c0_16 = arith.constant 0 : index
    %c0_17 = arith.constant 0 : index
    %21 = vector.load %arg6[%c0_16, %c0_17] : memref<32x32xbf16, #tpu.memory_space<vmem>>, vector<32x32xbf16>
    %cst_18 = arith.constant dense<0.000000e+00> : vector<16x32xf32>
    %22 = tpu.matmul %6, %21, %cst_18 {dimension_numbers = #tpu.dot_dimension_numbers<[1], [0], [0], [1], [0, 0, 1, 1], [], []>} : vector<16x32xbf16>, vector<32x32xbf16>, vector<16x32xf32> -> vector<16x32xf32>
    %23 = vector.extract_strided_slice %0 {offsets = [2, 0], sizes = [1, 32], strides = [1, 1]} : vector<3x32xf32> to vector<1x32xf32>
    %24 = vector.broadcast %23 : vector<1x32xf32> to vector<16x32xf32>
    %25 = arith.addf %22, %24 : vector<16x32xf32>
    %26 = arith.truncf %25 : vector<16x32xf32> to vector<16x32xbf16>
    %c0_19 = arith.constant 0 : index
    %c0_20 = arith.constant 0 : index
    %27 = vector.load %arg10[%c0_19, %c0_20] : memref<16x32xbf16, #tpu.memory_space<vmem>>, vector<16x32xbf16>
    tpu.vector_store %arg10[%c0_19, %c0_20], %26 {strides = array<i32>} : memref<16x32xbf16, #tpu.memory_space<vmem>>, vector<16x32xbf16>,
    return
  }
  func.func @transform_0(%arg0: i32) -> (i32, i32) {
    %c0_i32 = arith.constant 0 : i32
    %c0_i32_0 = arith.constant 0 : i32
    return %arg0, %c0_i32 : i32, i32
  }
  func.func @transform_1(%arg0: i32) -> (i32, i32) {
    %c0_i32 = arith.constant 0 : i32
    %c0_i32_0 = arith.constant 0 : i32
    return %arg0, %c0_i32 : i32, i32
  }
  func.func @transform_2(%arg0: i32) -> (i32, i32) {
    %c0_i32 = arith.constant 0 : i32
    %c0_i32_0 = arith.constant 0 : i32
    return %arg0, %c0_i32 : i32, i32
  }
  func.func @transform_3(%arg0: i32) -> (i32, i32) {
    %c0_i32 = arith.constant 0 : i32
    %c0_i32_0 = arith.constant 0 : i32
    %c0_i32_1 = arith.constant 0 : i32
    return %c0_i32, %c0_i32_0 : i32, i32
  }
  func.func @transform_4(%arg0: i32) -> (i32, i32) {
    %c0_i32 = arith.constant 0 : i32
    %c0_i32_0 = arith.constant 0 : i32
    %c0_i32_1 = arith.constant 0 : i32
    return %c0_i32, %c0_i32_0 : i32, i32
  }
  func.func @transform_5(%arg0: i32) -> (i32, i32) {
    %c0_i32 = arith.constant 0 : i32
    %c0_i32_0 = arith.constant 0 : i32
    %c0_i32_1 = arith.constant 0 : i32
    return %c0_i32, %c0_i32_0 : i32, i32
  }
  func.func @transform_6(%arg0: i32) -> (i32, i32) {
    %c0_i32 = arith.constant 0 : i32
    %c0_i32_0 = arith.constant 0 : i32
    %c0_i32_1 = arith.constant 0 : i32
    return %c0_i32, %c0_i32_0 : i32, i32
  }
  func.func @transform_7(%arg0: i32) -> (i32, i32) {
    %c0_i32 = arith.constant 0 : i32
    %c0_i32_0 = arith.constant 0 : i32
    return %arg0, %c0_i32 : i32, i32
  }
  func.func @transform_8(%arg0: i32) -> (i32, i32) {
    %c0_i32 = arith.constant 0 : i32
    %c0_i32_0 = arith.constant 0 : i32
    return %arg0, %c0_i32 : i32, i32
  }
  func.func @transform_9(%arg0: i32) -> (i32, i32) {
    %c0_i32 = arith.constant 0 : i32
    %c0_i32_0 = arith.constant 0 : i32
    return %arg0, %c0_i32 : i32, i32
  }
}

</mosaic_0001>

<bundles_post_ra>
// kernel: tpu_custom_call.1
= control target key start
LH: loop header
LB: loop body
LE: loop exit
PB: predicated region body
PF: predicated region fallthrough
CT: control target
= control target key end

     0   :  { %15 = vsyncpa [#allocation3], 0  ;;  %s968_s0 = inlined_call_operand.hbm [shape: f32[16,32], index: 0, kind: input, shape index: {}]   ;;  %s969_s1 = inlined_call_operand.hbm [shape: f32[16,32], index: 1, kind: input, shape index: {}]   ;;  %s970_s2 = inlined_call_operand.hbm [shape: f32[16,32], index: 2, kind: input, shape index: {}]   ;;  %s971_s3 = inlined_call_operand.hbm [shape: bf16[32,32], index: 3, kind: input, shape index: {}]   ;;  %s972_s4 = inlined_call_operand.hbm [shape: bf16[32,32], index: 4, kind: input, shape index: {}]   ;;  %s973_s5 = inlined_call_operand.hbm [shape: bf16[32,32], index: 5, kind: input, shape index: {}]   ;;  %s974_s6 = inlined_call_operand.hbm [shape: f32[3,32], index: 6, kind: input, shape index: {}]   ;;  %s975_s7 = inlined_call_operand.hbm [shape: bf16[16,32], index: 7, kind: output, shape index: {0}]   ;;  %s976_s8 = inlined_call_operand.hbm [shape: bf16[16,32], index: 8, kind: output, shape index: {1}]   ;;  %s977_s9 = inlined_call_operand.hbm [shape: bf16[16,32], index: 9, kind: output, shape index: {2}]  }
   0x1   :  { %16 = vsyncpa [#allocation6], 0 }
   0x2   :  { %17 = vsyncpa [#allocation9], 0 }
   0x3   :  { %18 = vsyncpa [#allocation12], 0 }
   0x4   :  { %19 = vsyncpa [#allocation4], 0 }
   0x5   :  { %20 = vsyncpa [#allocation16], 0  ;;  %s718_s30 = smov [#allocation5]   ;;  %s719_s11 = smov [#allocation8]  }
   0x6   :  { %s38_s10 = sshll.u32 %s718_s30, 4  ;;  %s62_s12 = sshll.u32 %s719_s11, 4  ;;  %s39_s10 = int_to_ptr.vmem [resolvable:$true] %s38_s10  ;;  %s784_s12 = int_to_ptr.vmem [resolvable:$true] %s62_s12 }
   0x7   :  { %s486_s15 = scalar_lea.hbm %s969_s1, 256 }
   0x8   :  { %p487_p0 = scmp.ne.s32.totalorder %s969_s1, %s486_s15  ;;  %p490_p1 = scmp.lt.u32.totalorder %s486_s15, %s969_s1 }
   0xa   :  { %p492_p2 = pnand %p490_p1, %p487_p0 }
   0xc   :  { %495 = shalt.err (!%p492_p2)
}
   0xd   :  { %s496_s20 = scalar_lea.vmem %s39_s10, 256  ;;  %p501_p4 = scmp.lt.s32.totalorder %s39_s10, %s39_s10 }
   0xe   :  { %p497_p3 = scmp.ne.s32.totalorder %s39_s10, %s496_s20  ;;  %p502_p5 = scmp.lt.s32.totalorder %s496_s20, %s496_s20 }
  0x10   :  { %p503_p6 = por %p502_p5, %p501_p4 }
  0x12   :  { %p504_p7 = pnand %p503_p6, %p497_p3 }
  0x14   :  { %507 = shalt.err (!%p504_p7)
}
  0x15   :  { %s720_s21 = smov 128   ;;  %s721_s22 = smov 8  }
  0x16   :  { %44 = dma.hbm_to_vmem [thread:$0]  %s969_s1, 256, %s39_s10, [#allocation6], %s720_s21, %s720_s21, %s721_s22  }
  0x17   :  { %s508_s27 = scalar_lea.hbm %s971_s3, 256 }
  0x18   :  { %p509_p8 = scmp.ne.s32.totalorder %s971_s3, %s508_s27  ;;  %p512_p9 = scmp.lt.u32.totalorder %s508_s27, %s971_s3 }
  0x1a   :  { %p514_p10 = pnand %p512_p9, %p509_p8 }
  0x1c   :  { %517 = shalt.err (!%p514_p10)
}
  0x1d   :  { %s518_s13 = scalar_lea.vmem %s784_s12, 256  ;;  %p523_p12 = scmp.lt.s32.totalorder %s784_s12, %s784_s12 }
  0x1e   :  { %p519_p11 = scmp.ne.s32.totalorder %s784_s12, %s518_s13  ;;  %p524_p13 = scmp.lt.s32.totalorder %s518_s13, %s518_s13 }
  0x20   :  { %p525_p0 = por %p524_p13, %p523_p12 }
  0x22   :  { %p526_p1 = pnand %p525_p0, %p519_p11 }
  0x24   :  { %529 = shalt.err (!%p526_p1)
}
  0x25   :  { %s722_s1 = smov 64   ;;  %s723_s10 = smov 4  }
  0x26   :  { %68 = dma.hbm_to_vmem [thread:$0]  %s971_s3, 256, %s784_s12, [#allocation9], %s722_s1, %s722_s1, %s723_s10  }
  0x27   :  { %s724_s16 = smov [#allocation11]   ;;  %s725_s18 = smov [#allocation2]  }
  0x28   :  { %s86_s17 = sshll.u32 %s724_s16, 4  ;;  %s26_s19 = sshll.u32 %s725_s18, 4  ;;  %s87_s17 = int_to_ptr.vmem [resolvable:$true] %s86_s17  ;;  %s821_s19 = int_to_ptr.vmem [resolvable:$true] %s26_s19 }
  0x29   :  { %s530_s24 = scalar_lea.hbm %s973_s5, 256 }
  0x2a   :  { %p531_p2 = scmp.ne.s32.totalorder %s973_s5, %s530_s24  ;;  %p534_p3 = scmp.lt.u32.totalorder %s530_s24, %s973_s5 }
  0x2c   :  { %p536_p4 = pnand %p534_p3, %p531_p2 }
  0x2e   :  { %539 = shalt.err (!%p536_p4)
}
  0x2f   :  { %s540_s3 = scalar_lea.vmem %s87_s17, 256  ;;  %p545_p6 = scmp.lt.s32.totalorder %s87_s17, %s87_s17 }
  0x30   :  { %p541_p5 = scmp.ne.s32.totalorder %s87_s17, %s540_s3  ;;  %p546_p7 = scmp.lt.s32.totalorder %s540_s3, %s540_s3 }
  0x32   :  { %p547_p8 = por %p546_p7, %p545_p6 }
  0x34   :  { %p548_p9 = pnand %p547_p8, %p541_p5 }
  0x36   :  { %551 = shalt.err (!%p548_p9)
}
  0x37   :  { %92 = dma.hbm_to_vmem [thread:$0]  %s973_s5, 256, %s87_s17, [#allocation12], %s722_s1, %s722_s1, %s723_s10  }
  0x38   :  { %s552_s13 = scalar_lea.hbm %s968_s0, 256 }
  0x39   :  { %p553_p10 = scmp.ne.s32.totalorder %s968_s0, %s552_s13  ;;  %p556_p11 = scmp.lt.u32.totalorder %s552_s13, %s968_s0 }
  0x3b   :  { %p558_p12 = pnand %p556_p11, %p553_p10 }
  0x3d   :  { %561 = shalt.err (!%p558_p12)
}
  0x3e   :  { %s562_s20 = scalar_lea.vmem %s821_s19, 256  ;;  %p567_p0 = scmp.lt.s32.totalorder %s821_s19, %s821_s19 }
  0x3f   :  { %p563_p13 = scmp.ne.s32.totalorder %s821_s19, %s562_s20  ;;  %p568_p1 = scmp.lt.s32.totalorder %s562_s20, %s562_s20 }
  0x41   :  { %p569_p2 = por %p568_p1, %p567_p0 }
  0x43   :  { %p570_p3 = pnand %p569_p2, %p563_p13 }
  0x45   :  { %573 = shalt.err (!%p570_p3)
}
  0x46   :  { %32 = dma.hbm_to_vmem [thread:$0]  %s968_s0, 256, %s821_s19, [#allocation3], %s720_s21, %s720_s21, %s721_s22  }
  0x47   :  { %s726_s23 = smov [#allocation7]   ;;  %s727_s25 = smov [#allocation10]  }
  0x48   :  { %s50_s24 = sshll.u32 %s726_s23, 4  ;;  %s74_s26 = sshll.u32 %s727_s25, 4  ;;  %s51_s24 = int_to_ptr.vmem [resolvable:$true] %s50_s24  ;;  %s858_s26 = int_to_ptr.vmem [resolvable:$true] %s74_s26 }
  0x49   :  { %s574_s3 = scalar_lea.hbm %s970_s2, 256 }
  0x4a   :  { %p575_p4 = scmp.ne.s32.totalorder %s970_s2, %s574_s3  ;;  %p578_p5 = scmp.lt.u32.totalorder %s574_s3, %s970_s2 }
  0x4c   :  { %p580_p6 = pnand %p578_p5, %p575_p4 }
  0x4e   :  { %583 = shalt.err (!%p580_p6)
}
  0x4f   :  { %s584_s0 = scalar_lea.vmem %s51_s24, 256  ;;  %p589_p8 = scmp.lt.s32.totalorder %s51_s24, %s51_s24 }
  0x50   :  { %p585_p7 = scmp.ne.s32.totalorder %s51_s24, %s584_s0  ;;  %p590_p9 = scmp.lt.s32.totalorder %s584_s0, %s584_s0 }
  0x52   :  { %p591_p10 = por %p590_p9, %p589_p8 }
  0x54   :  { %p592_p11 = pnand %p591_p10, %p585_p7 }
  0x56   :  { %595 = shalt.err (!%p592_p11)
}
  0x57   :  { %56 = dma.hbm_to_vmem [thread:$0]  %s970_s2, 256, %s51_s24, [#allocation6], %s720_s21, %s720_s21, %s721_s22  }
  0x58   :  { %s596_s16 = scalar_lea.hbm %s972_s4, 256 }
  0x59   :  { %p597_p12 = scmp.ne.s32.totalorder %s972_s4, %s596_s16  ;;  %p600_p13 = scmp.lt.u32.totalorder %s596_s16, %s972_s4 }
  0x5b   :  { %p602_p0 = pnand %p600_p13, %p597_p12 }
  0x5d   :  { %605 = shalt.err (!%p602_p0)
}
  0x5e   :  { %s606_s23 = scalar_lea.vmem %s858_s26, 256  ;;  %p611_p2 = scmp.lt.s32.totalorder %s858_s26, %s858_s26 }
  0x5f   :  { %p607_p1 = scmp.ne.s32.totalorder %s858_s26, %s606_s23  ;;  %p612_p3 = scmp.lt.s32.totalorder %s606_s23, %s606_s23 }
  0x61   :  { %p613_p4 = por %p612_p3, %p611_p2 }
  0x63   :  { %p614_p5 = pnand %p613_p4, %p607_p1 }
  0x65   :  { %617 = shalt.err (!%p614_p5)
}
  0x66   :  { %80 = dma.hbm_to_vmem [thread:$0]  %s972_s4, 256, %s858_s26, [#allocation9], %s722_s1, %s722_s1, %s723_s10  }
  0x67   :  { %s728_s22 = smov [#allocation13]   ;;  %s618_s28 = scalar_lea.hbm %s974_s6, 64 }
  0x68   :  { %s99_s24 = sshll.u32 %s728_s22, 4  ;;  %p619_p6 = scmp.ne.s32.totalorder %s974_s6, %s618_s28  ;;  %s100_s24 = int_to_ptr.vmem [resolvable:$true] %s99_s24 }
  0x69   :  { %p622_p7 = scmp.lt.u32.totalorder %s618_s28, %s974_s6 }
  0x6b   :  { %p624_p8 = pnand %p622_p7, %p619_p6 }
  0x6d   :  { %627 = shalt.err (!%p624_p8)
}
  0x6e   :  { %s628_s11 = scalar_lea.vmem %s100_s24, 64  ;;  %p633_p10 = scmp.lt.s32.totalorder %s100_s24, %s100_s24 }
  0x6f   :  { %p629_p9 = scmp.ne.s32.totalorder %s100_s24, %s628_s11  ;;  %p634_p11 = scmp.lt.s32.totalorder %s628_s11, %s628_s11 }
  0x71   :  { %p635_p12 = por %p634_p11, %p633_p10 }
  0x73   :  { %p636_p13 = pnand %p635_p12, %p629_p9 }
  0x75   :  { %639 = shalt.err (!%p636_p13)
}
  0x76   :  { %102 = dma.hbm_to_vmem [thread:$0]  %s974_s6, 64, %s100_s24, [#allocation12]  }
  0x77   :  { %706 = dma.done.wait [#allocation3], 256  }
  0x78   :  { %707 = vsyncadd [#allocation3], 4294967040 }
  0x79   :  { %708 = dma.done.wait [#allocation6], 512  }
  0x7a   :  { %709 = vsyncadd [#allocation6], 4294966784 }
  0x7b   :  { %710 = dma.done.wait [#allocation9], 512  }
  0x7c   :  { %711 = vsyncadd [#allocation9], 4294966784 }
  0x7d   :  { %712 = dma.done.wait [#allocation12], 320  }
  0x7e   :  { %713 = vsyncadd [#allocation12], 4294966976  ;;  %v729_v0 = vmov 0.0   ;;  %vm730_vm0 = vmmov 0   ;;  %v480_v1 = vld [vmem:[#allocation8] sm:$0xff]   ;;  %v481_v2 = vld [vmem:[#allocation8 + $0x8] sm:$0xff]   ;;  %v139_v16 = vlaneseq }
  0x7f   :  { %440 = vmatprep.subr.bf16.mxu0 %v729_v0  ;;  %448 = vmatprep.subr.bf16.mxu1 %v729_v0  ;;  %v482_v3 = vld [vmem:[#allocation10] sm:$0xff]   ;;  %v127_v5 = vld [vmem:[#allocation2 + $0x8] sm:$0xff]  ;;  %v483_v6 = vld [vmem:[#allocation11] sm:$0xff]   ;;  %vm155_vm1 = vcmask 261120   ;;  %vm208_vm2 = vcmask 257024   ;;  %s731_s6 = smov [#allocation14]  }
  0x80   :  { %444 = vmatprep.mubr.msk.bf16.mxu0 %vm730_vm0, %v729_v0  ;;  %452 = vmatprep.mubr.msk.bf16.mxu1 %vm730_vm0, %v729_v0  ;;  %v126_v4 = vld [vmem:[#allocation2] sm:$0xff]  ;;  %v484_v8 = vld [vmem:[#allocation10 + $0x8] sm:$0xff]   ;;  %v129_v9 = vld [vmem:[#allocation5] sm:$0xff]  ;;  %v140_v17 = vshrl.u32 %v139_v16, 7  ;;  %s364_s0 = sshll.u32 %s731_s6, 4  ;;  %s732_s19 = smov [#allocation15]   ;;  %s365_s0 = int_to_ptr.vmem [resolvable:$true] %s364_s0 }
  0x81   :  { %441 = vmatpush3.bf16.msra.mxu0 %v480_v1  ;;  %449 = vmatpush3.bf16.msra.mxu1 %v482_v3  ;;  %v128_v7 = vpack.c.bf16 %v127_v5, %v126_v4  ;;  %v130_v10 = vld [vmem:[#allocation5 + $0x8] sm:$0xff]  ;;  %v132_v13 = vld [vmem:[#allocation7] sm:$0xff]  ;;  %v133_v14 = vld [vmem:[#allocation7 + $0x8] sm:$0xff]  ;;  %s376_s13 = sshll.u32 %s732_s19, 4  ;;  %s640_s14 = scalar_lea.vmem %s365_s0, 128  ;;  %s913_s13 = int_to_ptr.vmem [resolvable:$true] %s376_s13 }
  0x82   :  { %442 = vmatprep.subr.bf16.mxu0 %v729_v0  ;;  %450 = vmatprep.subr.bf16.mxu1 %v729_v0  ;;  %v131_v11 = vpack.c.bf16 %v130_v10, %v129_v9  ;;  %v485_v12 = vld [vmem:[#allocation11 + $0x8] sm:$0xff]   ;;  %v134_v15 = vpack.c.bf16 %v133_v14, %v132_v13  ;;  %v141_v18 = vsub.s32 0, %v140_v17  ;;  %v125_v19 = vld [vmem:[#allocation13] sm:$0x7]  ;;  %v217_v20 = vsub.s32 1, %v140_v17  ;;  %p641_p0 = scmp.ne.s32.totalorder %s365_s0, %s640_s14  ;;  %p645_p1 = scmp.lt.s32.totalorder %s365_s0, %s365_s0 }
  0x83   :  { %v291_v26 = vsub.s32 2, %v140_v17  ;;  %p646_p2 = scmp.lt.s32.totalorder %s640_s14, %s640_s14 }
  0x84   :  { %v142_v21 = vrot.slane %v125_v19, %v141_v18  ;;  %v218_v22 = vrot.slane %v125_v19, %v217_v20 }
  0x85   :  { %443 = vmatpush3.bf16.msra.mxu0 %v481_v2  ;;  %451 = vmatpush3.bf16.msra.mxu1 %v484_v8  ;;  %v292_v39 = vrot.slane %v125_v19, %v291_v26  ;;  %p647_p3 = por %p646_p2, %p645_p1 }
  0x86   :  { %456 = vmatprep.subr.bf16.mxu0 %v729_v0 }
  0x87   :  { %p648_p4 = pnand %p647_p3, %p641_p0 }
  0x88   :  { %445 = vmatmul.mubr.msk.bf16.vlgmr.msra.gmra.mrb[0].mxu0 %vm155_vm1, %v128_v7  ;;  %453 = vmatmul.mubr.msk.bf16.vlgmr.msra.gmra.mrb[0].mxu1 %vm155_vm1, %v131_v11 }
  0x89   :  { %457 = vmatpush3.bf16.msra.mxu0 %v483_v6  ;;  %460 = vmatprep.mubr.msk.bf16.mxu0 %vm730_vm0, %v729_v0 }
  0x8a   :  { %458 = vmatprep.subr.bf16.mxu0 %v729_v0 }
  0x8d   :  { %459 = vmatpush3.bf16.msra.mxu0 %v485_v12 }
  0x90   :  { %461 = vmatmul.mubr.msk.bf16.vlgmr.msra.gmra.mrb[4].mxu0 %vm155_vm1, %v134_v15 }
 0x15b   :  { %v193_v23 = vpop.f32.mrb[0].mxu0  ;;  %v268_v28 = vpop.f32.mrb[0].mxu1 }
 0x15c   :  { %v194_v24 = vadd.f32 %v193_v23, %v142_v21  ;;  %v446_v25 = vpop.f32.mrb[1].mxu0  ;;  %v269_v32 = vadd.f32 %v268_v28, %v218_v22  ;;  %v454_v33 = vpop.f32.mrb[1].mxu1 }
 0x15d   :  { %v196_v27 = vpop.f32.mrb[2].mxu0  ;;  %v271_v34 = vpop.f32.mrb[2].mxu1 }
 0x15e   :  { %v425_v29 = vpack.c.bf16 %v194_v24, %v194_v24  ;;  %v197_v30 = vadd.f32 %v196_v27, %v142_v21  ;;  %v447_v31 = vpop.f32.mrb[3].mxu0  ;;  %v427_v36 = vpack.c.bf16 %v269_v32, %v269_v32  ;;  %v272_v37 = vadd.f32 %v271_v34, %v218_v22  ;;  %v455_v38 = vpop.f32.mrb[3].mxu1 }
 0x160   :  { %v426_v35 = vpack.c.bf16 %v197_v30, %v197_v30  ;;  %209 = vst.msk [vmem:[#allocation14] sm:$0xf] %vm208_vm2, %v425_v29  ;;  %v428_v40 = vpack.c.bf16 %v272_v37, %v272_v37  ;;  %283 = vst.msk [vmem:[#allocation15] sm:$0xf] %vm208_vm2, %v427_v36 }
 0x162   :  { %210 = vst.msk [vmem:[#allocation14 + $0x4] sm:$0xf] %vm208_vm2, %v426_v35 }
 0x163   :  { %v342_v41 = vpop.f32.mrb[4].mxu0 }
 0x164   :  { %651 = shalt.err (!%p648_p4)
}
 0x165   :  { %s652_s18 = scalar_lea.hbm %s975_s7, 128 }
 0x166   :  { %p653_p5 = scmp.ne.s32.totalorder %s975_s7, %s652_s18  ;;  %p656_p6 = scmp.lt.u32.totalorder %s652_s18, %s975_s7 }
 0x168   :  { %p658_p7 = pnand %p656_p6, %p653_p5 }
 0x16a   :  { %661 = shalt.err (!%p658_p7)
}
 0x16b   :  { %370 = dma.vmem_to_hbm [thread:$0]  %s365_s0, 128, %s975_s7, [#allocation4], %s722_s1, %s722_s1, %s723_s10   ;;  %v343_v42 = vadd.f32 %v342_v41, %v292_v39  ;;  %284 = vst.msk [vmem:[#allocation15 + $0x4] sm:$0xf] %vm208_vm2, %v428_v40  ;;  %v462_v43 = vpop.f32.mrb[5].mxu0 }
 0x16c   :  { %s733_s22 = smov [#allocation17]   ;;  %v345_v44 = vpop.f32.mrb[6].mxu0  ;;  %s662_s25 = scalar_lea.vmem %s913_s13, 128 }
 0x16d   :  { %s388_s24 = sshll.u32 %s733_s22, 4  ;;  %p663_p8 = scmp.ne.s32.totalorder %s913_s13, %s662_s25  ;;  %s389_s24 = int_to_ptr.vmem [resolvable:$true] %s388_s24 }
 0x16e   :  { %p667_p9 = scmp.lt.s32.totalorder %s913_s13, %s913_s13  ;;  %p668_p10 = scmp.lt.s32.totalorder %s662_s25, %s662_s25 }
 0x170   :  { %p669_p11 = por %p668_p10, %p667_p9 }
 0x172   :  { %p670_p12 = pnand %p669_p11, %p663_p8 }
 0x174   :  { %673 = shalt.err (!%p670_p12)
}
 0x175   :  { %s674_s3 = scalar_lea.hbm %s976_s8, 128 }
 0x176   :  { %p675_p13 = scmp.ne.s32.totalorder %s976_s8, %s674_s3  ;;  %p678_p0 = scmp.lt.u32.totalorder %s674_s3, %s976_s8 }
 0x178   :  { %p680_p1 = pnand %p678_p0, %p675_p13 }
 0x17a   :  { %683 = shalt.err (!%p680_p1)
}
 0x17b   :  { %382 = dma.vmem_to_hbm [thread:$0]  %s913_s13, 128, %s976_s8, [#allocation16], %s722_s1, %s722_s1, %s723_s10   ;;  %v429_v45 = vpack.c.bf16 %v343_v42, %v343_v42  ;;  %v346_v46 = vadd.f32 %v345_v44, %v292_v39  ;;  %v463_v47 = vpop.f32.mrb[7].mxu0 }
 0x17c   :  { %s684_s26 = scalar_lea.vmem %s389_s24, 128  ;;  %p689_p3 = scmp.lt.s32.totalorder %s389_s24, %s389_s24 }
 0x17d   :  { %357 = vst.msk [vmem:[#allocation17] sm:$0xf] %vm208_vm2, %v429_v45  ;;  %v430_v48 = vpack.c.bf16 %v346_v46, %v346_v46  ;;  %p685_p2 = scmp.ne.s32.totalorder %s389_s24, %s684_s26  ;;  %p690_p4 = scmp.lt.s32.totalorder %s684_s26, %s684_s26 }
 0x17f   :  { %358 = vst.msk [vmem:[#allocation17 + $0x4] sm:$0xf] %vm208_vm2, %v430_v48  ;;  %p691_p5 = por %p690_p4, %p689_p3 }
 0x181   :  { %p692_p6 = pnand %p691_p5, %p685_p2 }
 0x183   :  { %695 = shalt.err (!%p692_p6)
}
 0x184   :  { %s696_s8 = scalar_lea.hbm %s977_s9, 128 }
 0x185   :  { %p697_p7 = scmp.ne.s32.totalorder %s977_s9, %s696_s8  ;;  %p700_p8 = scmp.lt.u32.totalorder %s696_s8, %s977_s9 }
 0x187   :  { %p702_p9 = pnand %p700_p8, %p697_p7 }
 0x189   :  { %705 = shalt.err (!%p702_p9)
}
 0x18a   :  { %394 = dma.vmem_to_hbm [thread:$0]  %s389_s24, 128, %s977_s9, [#allocation16], %s722_s1, %s722_s1, %s723_s10  }
 0x18b   :  { %714 = dma.done.wait [#allocation4], 128  }
 0x18c   :  { %715 = vsyncadd [#allocation4], 4294967168 }
 0x18d   :  { %716 = dma.done.wait [#allocation16], 256  }
 0x18e   :  { %717 = vsyncadd [#allocation16], 4294967040 }
 0x18f   :  { %404 = vsyncpa [#allocation3], 1 }
 0x190   :  { %405 = vsyncpa [#allocation6], 1 }
 0x191   :  { %406 = vsyncpa [#allocation9], 1 }
 0x192   :  { %407 = vsyncpa [#allocation12], 1 }
 0x193   :  { %408 = vsyncpa [#allocation4], 1 }
 0x194   :  { %409 = vsyncpa [#allocation16], 1 }

</bundles_post_ra>
